<compile_context>
chip_gen: v6e
topology: v6e:2x2x1
jax: 0.10.0
libtpu: 0.0.40
codegen_flags: <defaults>
</compile_context>

<pallas_src>
import functools

import jax
import jax.numpy as jnp
from jax import lax
from jax.experimental import pallas as pl
from jax.experimental.pallas import tpu as pltpu


def _round_up(x, m):
    return ((x + m - 1) // m) * m


def _cdiv(a, b):
    return (a + b - 1) // b


def _sp_gram_kernel(s_ref, t_ref, gs_ref, gt_ref, *, tk, d_s, d_t, k_s, k_t,
                    nk_inner, total_blocks):
    # s_ref/t_ref: (B, tk) activation tiles (native dtype).
    # gs_ref/gt_ref: (1, B, B) f32 output blocks, resident across the inner
    # 'arbitrary' K axis -> used directly as accumulators.
    c = pl.program_id(0)
    k = pl.program_id(1)
    g = c * nk_inner + k                      # global K-block index

    @pl.when(k == 0)
    def _():
        gs_ref[...] = jnp.zeros_like(gs_ref)
        gt_ref[...] = jnp.zeros_like(gt_ref)

    # Row-row contraction: G += X_blk @ X_blk.T (contract dim 1 of both
    # operands) -- no transposed copy of the streamed block is materialized.
    # TODO(synk): verify via bundle dump that Mosaic does not insert a vxpose
    # on the rhs block once tiles are large (would flip HBM-bound -> XLU-bound).
    dn = (((1,), (1,)), ((), ()))

    def _accum(x_ref, acc_ref, d_true, k_blocks):
        def do():
            x = x_ref[...]
            if d_true % tk != 0:
                # Mask the ragged lane tail of the (possibly OOB) last block.
                col = g * tk + lax.broadcasted_iota(jnp.int32, x.shape, 1)
                x = jnp.where(col < d_true, x, jnp.zeros_like(x))
            acc_ref[0] += lax.dot_general(
                x, x, dn, preferred_element_type=jnp.float32)

        if k_blocks == total_blocks:          # static: no guard needed
            do()
        else:                                 # narrower input: skip past its end
            pl.when(g < k_blocks)(do)

    _accum(s_ref, gs_ref, d_s, k_s)
    _accum(t_ref, gt_ref, d_t, k_t)


def _sp_finalize_kernel(gs_ref, gt_ref, loss_ref, *, inv_count):
    # gs_ref/gt_ref: (NC, B, B) f32 partial Grams; loss_ref: (1, 1) SMEM.
    g_s = jnp.sum(gs_ref[...], axis=0)
    g_t = jnp.sum(gt_ref[...], axis=0)
    # F.normalize(p=2, dim=1): x / max(||x||, 1e-12) == x * rsqrt(max(||x||^2, 1e-24))
    eps2 = jnp.float32(1e-24)
    inv_s = lax.rsqrt(jnp.maximum(jnp.sum(g_s * g_s, axis=1, keepdims=True), eps2))
    inv_t = lax.rsqrt(jnp.maximum(jnp.sum(g_t * g_t, axis=1, keepdims=True), eps2))
    diff = g_s * inv_s - g_t * inv_t
    loss_ref[0, 0] = jnp.sum(diff * diff) * jnp.float32(inv_count)


def sp_loss(fm_s, fm_t, *, reduction="mean", block_k=None, cast_inputs_to=None):
    """SP loss. fm_s, fm_t: (B, ...) arrays with matching batch size."""
    assert fm_s.shape[0] == fm_t.shape[0], "batch sizes must match"
    B = fm_s.shape[0]
    s2 = fm_s.reshape(B, -1)
    t2 = fm_t.reshape(B, -1)
    if cast_inputs_to is not None:
        # Optional bandwidth saver (e.g. jnp.bfloat16) -- only a net win when
        # the cast fuses with the upstream producer; accumulation stays f32.
        s2 = s2.astype(cast_inputs_to)
        t2 = t2.astype(cast_inputs_to)
    d_s, d_t = s2.shape[1], t2.shape[1]
    d_max = max(d_s, d_t)
    isz_s = jnp.dtype(s2.dtype).itemsize
    isz_t = jnp.dtype(t2.dtype).itemsize

    # ----- VMEM budget & adaptive K tile -----
    try:
        vmem_cap = int(pltpu.get_tpu_info().vmem_capacity_bytes)
    except Exception:
        vmem_cap = 64 * 1024 * 1024            # v7x-safe fallback
    vmem_budget = min(int(vmem_cap * 0.7), 96 * 1024 * 1024)

    if block_k is not None:
        tk = max(128, _round_up(int(block_k), 128))
    else:
        out_bytes = 2 * 2 * B * B * 4          # 2 f32 (1,B,B) outputs x 2 buffers
        margin = 2 * 1024 * 1024
        avail = max(0, vmem_budget - out_bytes - margin)
        denom = 2 * B * (isz_s + isz_t)        # 2 buffers per streamed input
        tk_fit = max(128, (avail // denom) // 128 * 128)   # biggest tile that fits
        tk_half = max(128, _round_up(_cdiv(d_max, 2), 128))  # >=2 K blocks for v7x split
        tk = int(min(tk_fit, tk_half))

    k_s = _cdiv(d_s, tk)
    k_t = _cdiv(d_t, tk)
    k_max = max(k_s, k_t)
    nc = 2 if k_max >= 2 else 1                # leading 'parallel' axis (v7x 2 TCs)
    nk_inner = _cdiv(k_max, nc)
    total_blocks = nc * nk_inner

    if reduction == "mean":
        inv_count = 1.0 / float(B * B)
    elif reduction == "sum":
        inv_count = 1.0
    else:
        raise ValueError(f"unsupported reduction: {reduction}")

    gram_kernel = functools.partial(
        _sp_gram_kernel, tk=tk, d_s=d_s, d_t=d_t, k_s=k_s, k_t=k_t,
        nk_inner=nk_inner, total_blocks=total_blocks)

    cost = pl.CostEstimate(
        flops=2 * B * B * (d_s + d_t),
        transcendentals=0,
        bytes_accessed=int(B * d_s * isz_s + B * d_t * isz_t + 2 * nc * B * B * 4),
    )

    gs_parts, gt_parts = pl.pallas_call(
        gram_kernel,
        out_shape=(jax.ShapeDtypeStruct((nc, B, B), jnp.float32),
                   jax.ShapeDtypeStruct((nc, B, B), jnp.float32)),
        grid_spec=pltpu.PrefetchScalarGridSpec(
            num_scalar_prefetch=0,
            grid=(nc, nk_inner),
            in_specs=[
                pl.BlockSpec(
                    (B, tk),
                    lambda c, k: (0, jnp.minimum(c * nk_inner + k, k_s - 1))),
                pl.BlockSpec(
                    (B, tk),
                    lambda c, k: (0, jnp.minimum(c * nk_inner + k, k_t - 1))),
            ],
            out_specs=[
                pl.BlockSpec((1, B, B), lambda c, k: (c, 0, 0)),
                pl.BlockSpec((1, B, B), lambda c, k: (c, 0, 0)),
            ],
        ),
        compiler_params=pltpu.CompilerParams(
            dimension_semantics=("parallel", "arbitrary"),
            vmem_limit_bytes=int(vmem_budget),
        ),
        cost_estimate=cost,
    )(s2, t2)

    # Tiny epilogue kernel: sum partials, normalize rows, MSE.
    loss = pl.pallas_call(
        functools.partial(_sp_finalize_kernel, inv_count=inv_count),
        out_shape=jax.ShapeDtypeStruct((1, 1), jnp.float32),
        in_specs=[
            pl.BlockSpec((nc, B, B), lambda: (0, 0, 0)),
            pl.BlockSpec((nc, B, B), lambda: (0, 0, 0)),
        ],
        out_specs=pl.BlockSpec((1, 1), lambda: (0, 0),
                               memory_space=pltpu.MemorySpace.SMEM),
    )(gs_parts, gt_parts)
    return loss[0, 0]


def _sp_loss_ref(fm_s, fm_t):
    # pure-JAX reference for sanity checking
    B = fm_s.shape[0]
    s = fm_s.reshape(B, -1).astype(jnp.float32)
    t = fm_t.reshape(B, -1).astype(jnp.float32)
    g_s = s @ s.T
    g_t = t @ t.T
    eps = 1e-12
    ng_s = g_s / jnp.maximum(jnp.linalg.norm(g_s, axis=1, keepdims=True), eps)
    ng_t = g_t / jnp.maximum(jnp.linalg.norm(g_t, axis=1, keepdims=True), eps)
    return jnp.mean((ng_s - ng_t) ** 2)


if __name__ == "__main__":
    key = jax.random.PRNGKey(0)
    k1, k2, k3, k4 = jax.random.split(key, 4)

    # Aligned case: B=2, C=4, H=W=16 (D = 1024).
    fm_s = jax.random.normal(k1, (2, 4, 16, 16), dtype=jnp.float32)
    fm_t = jax.random.normal(k2, (2, 4, 16, 16), dtype=jnp.float32)
    loss = sp_loss(fm_s, fm_t)
    jax.block_until_ready(loss)
    ref = _sp_loss_ref(fm_s, fm_t)
    assert jnp.allclose(loss, ref, atol=1e-5, rtol=1e-4), (loss, ref)

    # Ragged / mismatched-width case: exercises the in-kernel D-tail mask and
    # the student/teacher width guard (D_s=105, D_t=140) with no wrapper pad.
    fm_s2 = jax.random.normal(k3, (2, 3, 5, 7), dtype=jnp.float32)
    fm_t2 = jax.random.normal(k4, (2, 4, 5, 7), dtype=jnp.float32)
    loss2 = sp_loss(fm_s2, fm_t2)
    jax.block_until_ready(loss2)
    ref2 = _sp_loss_ref(fm_s2, fm_t2)
    assert jnp.allclose(loss2, ref2, atol=1e-5, rtol=1e-4), (loss2, ref2)

    print("KERNEL_OK")
</pallas_src>

<mosaic_0001>
module attributes {stable_mosaic.version = 11 : i64} {
  func.func @_sp_gram_kernel(%arg0: i32, %arg1: i32, %arg2: memref<2x512xf32, #tpu.memory_space<vmem>>, %arg3: memref<2x512xf32, #tpu.memory_space<vmem>>, %arg4: memref<1x2x2xf32, #tpu.memory_space<vmem>>, %arg5: memref<1x2x2xf32, #tpu.memory_space<vmem>>) attributes {dimension_semantics = [#tpu.dimension_semantics<parallel>, #tpu.dimension_semantics<arbitrary>], iteration_bounds = array<i64: 2, 1>, scalar_prefetch = 0 : i64, scratch_operands = 0 : i64, tpu.core_type = #tpu.core_type<tc>, window_params = [{transform_indices = @transform_0, window_bounds = array<i64: 2, 512>}, {transform_indices = @transform_1, window_bounds = array<i64: 2, 512>}, {transform_indices = @transform_2, window_bounds = array<i64: 1, 2, 2>}, {transform_indices = @transform_3, window_bounds = array<i64: 1, 2, 2>}]} {
    %c0_i32 = arith.constant 0 : i32
    %0 = arith.cmpi eq, %arg1, %c0_i32 : i32
    %1 = arith.extui %0 : i1 to i32
    %c0_i32_0 = arith.constant 0 : i32
    %2 = arith.cmpi ne, %1, %c0_i32_0 : i32
    scf.if %2 {
      %cst_17 = arith.constant 0.000000e+00 : f32
      %19 = vector.broadcast %cst_17 : f32 to vector<1x2x2xf32>
      %c0_18 = arith.constant 0 : index
      %c0_19 = arith.constant 0 : index
      %c0_20 = arith.constant 0 : index
      %20 = vector.load %arg4[%c0_18, %c0_19, %c0_20] : memref<1x2x2xf32, #tpu.memory_space<vmem>>, vector<1x2x2xf32>
      tpu.vector_store %arg4[%c0_18, %c0_19, %c0_20], %19 {strides = array<i32>} : memref<1x2x2xf32, #tpu.memory_space<vmem>>, vector<1x2x2xf32>,
      %cst_21 = arith.constant 0.000000e+00 : f32
      %21 = vector.broadcast %cst_21 : f32 to vector<1x2x2xf32>
      %c0_22 = arith.constant 0 : index
      %c0_23 = arith.constant 0 : index
      %c0_24 = arith.constant 0 : index
      %22 = vector.load %arg5[%c0_22, %c0_23, %c0_24] : memref<1x2x2xf32, #tpu.memory_space<vmem>>, vector<1x2x2xf32>
      tpu.vector_store %arg5[%c0_22, %c0_23, %c0_24], %21 {strides = array<i32>} : memref<1x2x2xf32, #tpu.memory_space<vmem>>, vector<1x2x2xf32>,
    } else {
    }
    %c0 = arith.constant 0 : index
    %c0_1 = arith.constant 0 : index
    %3 = vector.load %arg2[%c0, %c0_1] : memref<2x512xf32, #tpu.memory_space<vmem>>, vector<2x512xf32>
    %c0_2 = arith.constant 0 : index
    %c0_3 = arith.constant 0 : index
    %c0_4 = arith.constant 0 : index
    %4 = vector.load %arg4[%c0_2, %c0_3, %c0_4] : memref<1x2x2xf32, #tpu.memory_space<vmem>>, vector<1x2x2xf32>
    %5 = vector.shape_cast %4 : vector<1x2x2xf32> to vector<2x2xf32>
    %cst = arith.constant dense<0.000000e+00> : vector<2x2xf32>
    %6 = tpu.matmul %3, %3, %cst {dimension_numbers = #tpu.dot_dimension_numbers<[1], [1], [0], [0], [0, 0, 1, 0], [], []>} : vector<2x512xf32>, vector<2x512xf32>, vector<2x2xf32> -> vector<2x2xf32>
    %7 = arith.addf %5, %6 : vector<2x2xf32>
    %c0_5 = arith.constant 0 : index
    %c0_6 = arith.constant 0 : index
    %c0_7 = arith.constant 0 : index
    %8 = vector.load %arg4[%c0_5, %c0_6, %c0_7] : memref<1x2x2xf32, #tpu.memory_space<vmem>>, vector<1x2x2xf32>
    %9 = vector.shape_cast %8 : vector<1x2x2xf32> to vector<2x2xf32>
    %10 = vector.shape_cast %7 : vector<2x2xf32> to vector<1x2x2xf32>
    tpu.vector_store %arg4[%c0_5, %c0_6, %c0_7], %10 {strides = array<i32>} : memref<1x2x2xf32, #tpu.memory_space<vmem>>, vector<1x2x2xf32>,
    %c0_8 = arith.constant 0 : index
    %c0_9 = arith.constant 0 : index
    %11 = vector.load %arg3[%c0_8, %c0_9] : memref<2x512xf32, #tpu.memory_space<vmem>>, vector<2x512xf32>
    %c0_10 = arith.constant 0 : index
    %c0_11 = arith.constant 0 : index
    %c0_12 = arith.constant 0 : index
    %12 = vector.load %arg5[%c0_10, %c0_11, %c0_12] : memref<1x2x2xf32, #tpu.memory_space<vmem>>, vector<1x2x2xf32>
    %13 = vector.shape_cast %12 : vector<1x2x2xf32> to vector<2x2xf32>
    %cst_13 = arith.constant dense<0.000000e+00> : vector<2x2xf32>
    %14 = tpu.matmul %11, %11, %cst_13 {dimension_numbers = #tpu.dot_dimension_numbers<[1], [1], [0], [0], [0, 0, 1, 0], [], []>} : vector<2x512xf32>, vector<2x512xf32>, vector<2x2xf32> -> vector<2x2xf32>
    %15 = arith.addf %13, %14 : vector<2x2xf32>
    %c0_14 = arith.constant 0 : index
    %c0_15 = arith.constant 0 : index
    %c0_16 = arith.constant 0 : index
    %16 = vector.load %arg5[%c0_14, %c0_15, %c0_16] : memref<1x2x2xf32, #tpu.memory_space<vmem>>, vector<1x2x2xf32>
    %17 = vector.shape_cast %16 : vector<1x2x2xf32> to vector<2x2xf32>
    %18 = vector.shape_cast %15 : vector<2x2xf32> to vector<1x2x2xf32>
    tpu.vector_store %arg5[%c0_14, %c0_15, %c0_16], %18 {strides = array<i32>} : memref<1x2x2xf32, #tpu.memory_space<vmem>>, vector<1x2x2xf32>,
    return
  }
  func.func @transform_0(%arg0: i32, %arg1: i32) -> (i32, i32) {
    %c1_i32 = arith.constant 1 : i32
    %0 = arith.muli %arg0, %c1_i32 : i32
    %1 = arith.addi %0, %arg1 : i32
    %c1_i32_0 = arith.constant 1 : i32
    %2 = arith.minsi %1, %c1_i32_0 : i32
    %c0_i32 = arith.constant 0 : i32
    %c0_i32_1 = arith.constant 0 : i32
    return %c0_i32, %2 : i32, i32
  }
  func.func @transform_1(%arg0: i32, %arg1: i32) -> (i32, i32) {
    %c1_i32 = arith.constant 1 : i32
    %0 = arith.muli %arg0, %c1_i32 : i32
    %1 = arith.addi %0, %arg1 : i32
    %c1_i32_0 = arith.constant 1 : i32
    %2 = arith.minsi %1, %c1_i32_0 : i32
    %c0_i32 = arith.constant 0 : i32
    %c0_i32_1 = arith.constant 0 : i32
    return %c0_i32, %2 : i32, i32
  }
  func.func @transform_2(%arg0: i32, %arg1: i32) -> (i32, i32, i32) {
    %c0_i32 = arith.constant 0 : i32
    %c0_i32_0 = arith.constant 0 : i32
    %c0_i32_1 = arith.constant 0 : i32
    return %arg0, %c0_i32, %c0_i32_0 : i32, i32, i32
  }
  func.func @transform_3(%arg0: i32, %arg1: i32) -> (i32, i32, i32) {
    %c0_i32 = arith.constant 0 : i32
    %c0_i32_0 = arith.constant 0 : i32
    %c0_i32_1 = arith.constant 0 : i32
    return %arg0, %c0_i32, %c0_i32_0 : i32, i32, i32
  }
}

</mosaic_0001>

<bundles_post_ra>
// kernel: tpu_custom_call.1
= control target key start
LH: loop header
LB: loop body
LE: loop exit
PB: predicated region body
PF: predicated region fallthrough
CT: control target
= control target key end

     0   :  { %s1364_s0 = inlined_call_operand.hbm [shape: f32[2,1024], index: 0, kind: input, shape index: {}]   ;;  %s1365_s1 = inlined_call_operand.hbm [shape: f32[2,1024], index: 1, kind: input, shape index: {}]   ;;  %s1366_s2 = inlined_call_operand.hbm [shape: f32[2,2,2], index: 2, kind: output, shape index: {0}]   ;;  %s1367_s3 = inlined_call_operand.hbm [shape: f32[2,2,2], index: 3, kind: output, shape index: {1}]  }
   0x1   :  { %1369 = sst [smem:[#allocation15_spill]] %s1364_s0 }
   0x2   :  { %9 = vsyncpa [#allocation3], 0 }
   0x3   :  { %11 = vsyncpa [#allocation3 + $0x1], 0 }
   0x4   :  { %12 = vsyncpa [#allocation6], 0 }
   0x5   :  { %14 = vsyncpa [#allocation6 + $0x1], 0 }
   0x6   :  { %15 = vsyncpa [#allocation4], 0 }
   0x7   :  { %17 = vsyncpa [#allocation4 + $0x1], 0 }
   0x8   :  { %18 = vsyncpa [#allocation9], 0 }
   0x9   :  { %20 = vsyncpa [#allocation9 + $0x1], 0  ;;  %s1124_s12 = smov 0   ;;  %s1126_s13 = smov 0  }
   0xa   :  { %s1128_s14 = smov 0   ;;  %s1130_s15 = smov 0  }
   0xb   :  { %s1132_s16 = smov 0   ;;  %s1134_s17 = smov 0  }
   0xc   :  { %s1136_s18 = smov 0   ;;  %s1138_s19 = smov 0  }
   0xd   :  { %s1140_s20 = smov 0  }
   0xe LB: > { %s779_s21 = sadd.s32 4294967295, %s1096_s20   ;;  %s780_s22 = sadd.s32 4294967294, %s1096_s20   ;;  %s1096_s20 = sphi %s1140_s20, %s26_s20   ;;  %s1092_s19 = sphi %s1138_s19, %s1387_s19   ;;  %s1088_s18 = sphi %s1136_s18, %s1386_s18   ;;  %s1084_s17 = sphi %s1134_s17, %s1385_s17   ;;  %s1080_s16 = sphi %s1132_s16, %s1384_s16   ;;  %s1076_s15 = sphi %s1130_s15, %s1383_s15   ;;  %s1072_s14 = sphi %s1128_s14, %s1382_s14   ;;  %s1068_s13 = sphi %s1126_s13, %s1381_s13   ;;  %s1064_s12 = sphi %s1124_s12, %s1380_s12  }
   0xf   : > { %s38_s23 = sadd.s32 1, %s1092_s19  ;;  %p43_p0 = scmp.lt.s32.totalorder %s1092_s19, 1 }
  0x10   : > { %p40_p1 = scmp.ge.s32.totalorder %s38_s23, 2  ;;  %s51_s24 = sadd.s32 1, %s1084_s17 }
  0x11   : > { %s1173_s25 = scalar_select %p43_p0, %s1092_s19, 1 }
  0x12   : > { %s1389_s23 = smov (%p40_p1, %s38_s23), 0  ;;  %p58_p2 = scmp.ne.s32.totalorder %s1084_s17, %s1080_s16 }
  0x13   : > { %1370 = sst [smem:[#allocation14_spill]] %s1389_s23  ;;  %p59_p3 = scmp.eq.s32.totalorder %s1096_s20, 0 }
  0x14   : > { %p46_p4 = scmp.lt.s32.totalorder %s1389_s23, 1  ;;  %p64_p5 = scmp.ne.s32.totalorder %s1080_s16, %s1076_s15 }
  0x15   : > { %p1182_p6 = por %p59_p3, %p58_p2  ;;  %p65_p7 = scmp.eq.s32.totalorder %s779_s21, 0 }
  0x16   : > { %s47_s27 = scalar_select %p46_p4, %s1389_s23, 1 }
  0x17   : > { %p1187_p8 = por %p65_p7, %p64_p5  ;;  %s106_s29 = ssub.s32 %s1092_s19, %s1389_s23 }
  0x18   : > { %s48_s30 = ssub.s32 %s1173_s25, %s47_s27  ;;  %p107_p9 = scmp.eq.s32.totalorder %s106_s29, 0 }
  0x19   : > { %p49_p10 = scmp.eq.s32.totalorder %s48_s30, 0  ;;  %s109_s4 = sadd.s32 1, %s1072_s14 }
  0x1a   : > { %s1196_s5 = scalar_select %p107_p9, %s1072_s14, %s109_s4  }
  0x1b   : > { %s1199_s6 = scalar_select %p49_p10, %s1084_s17, %s51_s24  }
  0x1c   : > { %p119_p11 = scmp.ne.s32.totalorder %s1072_s14, %s1068_s13  ;;  %p120_p12 = scmp.eq.s32.totalorder %s779_s21, 1 }
  0x1d   : > { %p125_p13 = scmp.ne.s32.totalorder %s1068_s13, %s1064_s12  ;;  %p126_p0 = scmp.eq.s32.totalorder %s780_s22, 1 }
  0x1e   : > { %p1205_p1 = por %p120_p12, %p119_p11  ;;  %p824_p4 = scmp.lt.s32.totalorder %s1096_s20, 2 }
  0x1f   : > { %p1210_p3 = por %p126_p0, %p125_p13  ;;  %s1216_s9 = sand.u32 1, %s1084_s17  }
  0x20   : > { %s800_s10 = sshll.u32 %s1173_s25, 7  ;;  %s783_s11 = sshll.u32 %s1216_s9, 3 }
  0x21   : > { %s1375_s0 = sld [smem:[#allocation15_spill]]  ;;  %s176_s24 = scalar_lea.vmem [#allocation2], %s783_s11 }
  0x22   : > { %s187_s27 = sshll.u32 %s176_s24, 4  ;;  %p1225_p5 = pnand %p824_p4, %p1182_p6  ;;  %s188_s27 = int_to_ptr.vmem [resolvable:$true] %s187_s27 }
  0x23   : > { %p789_p7 = scmp.ge.s32.totalorder %s1096_s20, 1  ;;  %p214_p9 = scmp.lt.s32.totalorder %s1096_s20, 3 }
  0x24   : > { %s173_s30 = scalar_lea.sflag [#allocation3], %s1216_s9  ;;  %p904_p10 = pneg %p1225_p5 }
  0x25   : > { %s915_s25 = scalar_lea.vmem %s188_s27, 128  ;;  %s1098_s4 = smov [#allocation2]  }
  0x26   : > { %p916_p11 = scmp.ne.s32.totalorder %s188_s27, %s915_s25  ;;  %s920_s26 = sshll.u32 %s1098_s4, 4  ;;  %s921_s26 = int_to_ptr.vmem [resolvable:$false] %s920_s26 }
  0x27   : > { %s185_s22 = scalar_lea.hbm %s1375_s0, %s800_s10  ;;  %s922_s15 = scalar_lea.vmem %s921_s26, 256 }
  0x28   : > { %p918_p12 = pnand %p916_p11, %p904_p10  ;;  %p923_p6 = scmp.lt.s32.totalorder %s188_s27, %s921_s26 }
  0x29   : > { %p924_p0 = scmp.lt.s32.totalorder %s922_s15, %s915_s25 }
  0x2a   : > { %p919_p13 = pneg %p918_p12 }
  0x2b   : > { %p925_p4 = por %p924_p0, %p923_p6 }
  0x2d   : > { %p926_p2 = pnand %p925_p4, %p919_p13 }
  0x2f   : > { %929 = shalt.err (!%p926_p2)
}
  0x30   : > { %813 = dma.hbm_to_vmem [thread:$0]  (!%p1225_p5), %s185_s22, 128, %s188_s27, %s173_s30  }
  0x31   : > { %p1243_p11 = pnand %p789_p7, %p214_p9  ;;  %s207_s25 = scalar_lea.hbm %s1365_s1, %s800_s10 }
  0x32   : > { %s198_s26 = scalar_lea.vmem [#allocation5], %s783_s11  ;;  %s195_s0 = scalar_lea.sflag [#allocation6], %s1216_s9 }
  0x33   : > { %s209_s15 = sshll.u32 %s198_s26, 4  ;;  %s1099_s22 = smov [#allocation5]   ;;  %s210_s15 = int_to_ptr.vmem [resolvable:$true] %s209_s15 }
  0x34   : > { %s943_s23 = scalar_lea.vmem %s210_s15, 128  ;;  %s948_s27 = sshll.u32 %s1099_s22, 4  ;;  %s949_s27 = int_to_ptr.vmem [resolvable:$false] %s948_s27 }
  0x35   : > { %p944_p2 = scmp.ne.s32.totalorder %s210_s15, %s943_s23  ;;  %s950_s30 = scalar_lea.vmem %s949_s27, 256 }
  0x36   : > { %p951_p7 = scmp.lt.s32.totalorder %s210_s15, %s949_s27  ;;  %p952_p9 = scmp.lt.s32.totalorder %s950_s30, %s943_s23 }
  0x37   : > { %p946_p12 = pnand %p944_p2, %p904_p10 }
  0x38   : > { %p953_p6 = por %p952_p9, %p951_p7 }
  0x39   : > { %p947_p13 = pneg %p946_p12 }
  0x3b   : > { %p954_p0 = pnand %p953_p6, %p947_p13 }
  0x3d   : > { %957 = shalt.err (!%p954_p0)
}
  0x3e   : > { %816 = dma.hbm_to_vmem [thread:$0]  (!%p1225_p5), %s207_s25, 128, %s210_s15, %s195_s0  }
  0x3f   : > { %218 = sbr.rel (%p1243_p11) target bundleno = 321 (0x141), region = 28  ;;  %s220_s9 = sand.u32 (!%p1243_p11), 1, %s1080_s16  }
  0x40   : > { %s790_s10 = sshll.u32 (!%p1243_p11), %s220_s9, 3  ;;  %s221_s11 = scalar_lea.sflag (!%p1243_p11), [#allocation3], %s220_s9 }
  0x41   : > { %s224_s24 = scalar_lea.vmem (!%p1243_p11), [#allocation2], %s790_s10 }
  0x44   : > { %1047 = dma.done.wait (%p1187_p8), %s221_s11, 128  }
  0x45   : > { %1049 = vsyncadd (%p1187_p8), %s221_s11, 4294967168  ;;  %s230_s23 = scalar_lea.sflag [#allocation6], %s220_s9  ;;  %s233_s4 = scalar_lea.vmem [#allocation5], %s790_s10 }
  0x46   : > { %1051 = dma.done.wait (%p1187_p8), %s230_s23, 128  }
  0x47   : > { %1053 = vsyncadd (%p1187_p8), %s230_s23, 4294967168  ;;  %v288_v0 = vlaneseq  ;;  %v1100_v1 = vmov 1983009808   ;;  %v281_v6 = vld [vmem:[%s224_s24] sm:$0xff]  ;;  %v448_v7 = vld [vmem:[%s233_s4] sm:$0xff]  ;;  %s1268_s0 = sand.u32 1, %s1068_s13  }
  0x48   : > { %v286_v2 = vunpack.c.l.s4 %v1100_v1  ;;  %v284_v9 = vcombine.high %v281_v6, %v281_v6  ;;  %v451_v11 = vcombine.high %v448_v7, %v448_v7  ;;  %s792_s28 = sshll.u32 %s1268_s0, 1  ;;  %vm278_vm0 = vcmask 9216   ;;  %s796_s25 = sshll.u32 %s1088_s18, 5 }
  0x49   : > { %v289_v3 = vshrl.u32 %v288_v0, 7  ;;  %s258_s29 = scalar_lea.vmem [#allocation7], %s792_s28  ;;  %v1101_v18 = vmov 0.0   ;;  %s1272_s21 = scalar_lea.vmem [#allocation8], %s792_s28 }
  0x4a   : > { %v287_v4 = vunpack.c.0.s8 %v286_v2  ;;  %279 = vst.msk [vmem:[%s258_s29] sm:$0x3] %vm278_vm0, %v1101_v18  ;;  %280 = vst.msk [vmem:[%s1272_s21] sm:$0x3] %vm278_vm0, %v1101_v18  ;;  %s633_s26 = sshll.u32 %s258_s29, 4  ;;  %s1282_s27 = scalar_lea.hbm %s1366_s2, %s796_s25  ;;  %s1284_s26 = int_to_ptr.vmem [resolvable:$true] %s633_s26 }
  0x4b   : > { %s646_s30 = sshll.u32 %s1272_s21, 4  ;;  %s615_s9 = scalar_lea.sflag [#allocation4], %s1268_s0  ;;  %s647_s30 = int_to_ptr.vmem [resolvable:$true] %s646_s30 }
  0x4c   : > { %v290_v5 = vsub.s32 %v287_v4, %v289_v3  ;;  %s958_s10 = scalar_lea.vmem %s1284_s26, 32  ;;  %s1102_s11 = smov [#allocation7]  }
  0x4d   : > { %p959_p8 = scmp.ne.s32.totalorder %s1284_s26, %s958_s10  ;;  %s962_s24 = sshll.u32 %s1102_s11, 4  ;;  %s963_s24 = int_to_ptr.vmem [resolvable:$false] %s962_s24 }
  0x4e   : > { %v291_v8 = vrot.slane %v281_v6, %v290_v5  ;;  %v458_v10 = vrot.slane %v448_v7, %v290_v5  ;;  %v298_v13 = vrot.slane %v284_v9, %v290_v5  ;;  %v465_v14 = vrot.slane %v451_v11, %v290_v5  ;;  %s964_s23 = scalar_lea.vmem %s963_s24, 64  ;;  %p965_p4 = scmp.lt.s32.totalorder %s1284_s26, %s963_s24 }
  0x4f   : > { %p960_p5 = pnand %p959_p8, %p1205_p1  ;;  %p966_p11 = scmp.lt.s32.totalorder %s964_s23, %s958_s10 }
  0x50   : > { %v299_v12 = vcombine.high %v291_v8, %v291_v8  ;;  %v466_v15 = vcombine.high %v458_v10, %v458_v10  ;;  %v300_v16 = vcombine.high %v298_v13, %v298_v13  ;;  %v467_v17 = vcombine.high %v465_v14, %v465_v14 }
  0x51   : > { %v282_v20 = vld [vmem:[%s258_s29] sm:$0x3]  ;;  %v449_v27 = vld [vmem:[%s1272_s21] sm:$0x3]  ;;  %p961_p10 = pneg %p960_p5  ;;  %p967_p2 = por %p966_p11, %p965_p4 }
  0x52   : > { %335 = vmatprep.subr.mxu0 %v299_v12  ;;  %369 = vmatprep.mubr.f32.mxu0 %v299_v12 }
  0x53   : > { %336 = vmatpush1.xpose.msra.mxu0 %v291_v8  ;;  %405 = vmatprep.subr.mxu1 %v300_v16  ;;  %p968_p12 = pnand %p967_p2, %p961_p10 }
  0x54   : > { %439 = vmatprep.mubr.f32.mxu1 %v300_v16  ;;  %406 = vmatpush1.xpose.msra.mxu1 %v298_v13 }
  0x55   : > { %502 = vmatprep.subr.mxu0 %v466_v15  ;;  %572 = vmatprep.subr.mxu1 %v467_v17 }
  0x56   : > { %370 = vmatmul.mubr.f32.vlgmr.msra.gmra.mxu0 %v291_v8 }
  0x57   : > { %503 = vmatpush1.xpose.msra.mxu0 %v458_v10  ;;  %536 = vmatprep.mubr.f32.mxu0 %v466_v15 }
  0x58   : > { %440 = vmatmul.mubr.f32.vlgmr.msra.gmra.mxu1 %v298_v13 }
  0x59   : > { %573 = vmatpush1.xpose.msra.mxu1 %v465_v14  ;;  %606 = vmatprep.mubr.f32.mxu1 %v467_v17 }
  0x5a   : > { %537 = vmatmul.mubr.f32.vlgmr.msra.gmra.mxu0 %v458_v10 }
  0x5c   : > { %607 = vmatmul.mubr.f32.vlgmr.msra.gmra.mxu1 %v465_v14 }
 0x116   : > { %v371_v19 = vpop.f32.mrf.mxu0 }
 0x118   : > { %v441_v21 = vpop.f32.mrf.mxu1  ;;  %v373_v22 = vpop.f32.mrf.mxu0 }
 0x119   : > { %v442_v23 = vadd.f32 %v441_v21, %v371_v19 }
 0x11a   : > { %v443_v24 = vpop.f32.mrf.mxu1  ;;  %v538_v25 = vpop.f32.mrf.mxu0 }
 0x11b   : > { %v445_v26 = vadd.f32 %v442_v23, %v282_v20 }
 0x11c   : > { %v608_v28 = vpop.f32.mrf.mxu1  ;;  %v540_v29 = vpop.f32.mrf.mxu0 }
 0x11d   : > { %447 = vst.msk [vmem:[%s258_s29] sm:$0x3] %vm278_vm0, %v445_v26  ;;  %v609_v30 = vadd.f32 %v608_v28, %v538_v25 }
 0x11e   : > { %v610_v31 = vpop.f32.mrf.mxu1 }
 0x11f   : > { %971 = shalt.err (!%p968_p12)
}
 0x120   : > { %s972_s4 = scalar_lea.hbm %s1282_s27, 32  ;;  %s976_s15 = scalar_lea.hbm %s1366_s2, 64 }
 0x121   : > { %p973_p13 = scmp.ne.s32.totalorder %s1282_s27, %s972_s4  ;;  %p977_p6 = scmp.lt.s32.totalorder %s1282_s27, %s1366_s2 }
 0x122   : > { %p978_p0 = scmp.lt.s32.totalorder %s976_s15, %s972_s4 }
 0x123   : > { %p974_p7 = pnand %p973_p13, %p1205_p1 }
 0x124   : > { %p979_p8 = por %p978_p0, %p977_p6 }
 0x125   : > { %p975_p9 = pneg %p974_p7 }
 0x127   : > { %p980_p5 = pnand %p979_p8, %p975_p9 }
 0x129   : > { %983 = shalt.err (!%p980_p5)
}
 0x12a   : > { %806 = dma.vmem_to_hbm [thread:$0]  (%p1205_p1), %s1284_s26, 32, %s1282_s27, %s615_s9   ;;  %v612_v32 = vadd.f32 %v609_v30, %v449_v27 }
 0x12b   : > { %s644_s23 = scalar_lea.hbm %s1367_s3, %s796_s25  ;;  %s620_s4 = scalar_lea.sflag [#allocation9], %s1268_s0 }
 0x12c   : > { %613 = vst.msk [vmem:[%s1272_s21] sm:$0x3] %vm278_vm0, %v612_v32  ;;  %s984_s28 = scalar_lea.vmem %s647_s30, 32  ;;  %s1103_s29 = smov [#allocation8]  }
 0x12d   : > { %p985_p10 = scmp.ne.s32.totalorder %s647_s30, %s984_s28  ;;  %s988_s15 = sshll.u32 %s1103_s29, 4  ;;  %s989_s15 = int_to_ptr.vmem [resolvable:$false] %s988_s15 }
 0x12e   : > { %s990_s26 = scalar_lea.vmem %s989_s15, 64  ;;  %p991_p2 = scmp.lt.s32.totalorder %s647_s30, %s989_s15 }
 0x12f   : > { %p986_p4 = pnand %p985_p10, %p1205_p1  ;;  %p992_p12 = scmp.lt.s32.totalorder %s990_s26, %s984_s28 }
 0x131   : > { %p987_p11 = pneg %p986_p4  ;;  %p993_p13 = por %p992_p12, %p991_p2 }
 0x133   : > { %p994_p7 = pnand %p993_p13, %p987_p11 }
 0x135   : > { %997 = shalt.err (!%p994_p7)
}
 0x136   : > { %s998_s18 = scalar_lea.hbm %s644_s23, 32  ;;  %s1002_s25 = scalar_lea.hbm %s1367_s3, 64 }
 0x137   : > { %p999_p9 = scmp.ne.s32.totalorder %s644_s23, %s998_s18  ;;  %p1003_p8 = scmp.lt.s32.totalorder %s644_s23, %s1367_s3 }
 0x138   : > { %p1004_p5 = scmp.lt.s32.totalorder %s1002_s25, %s998_s18 }
 0x139   : > { %p1000_p6 = pnand %p999_p9, %p1205_p1 }
 0x13a   : > { %p1005_p10 = por %p1004_p5, %p1003_p8 }
 0x13b   : > { %p1001_p0 = pneg %p1000_p6 }
 0x13d   : > { %p1006_p4 = pnand %p1005_p10, %p1001_p0 }
 0x13f   : > { %1009 = shalt.err (!%p1006_p4)
}
 0x140   : > { %807 = dma.vmem_to_hbm [thread:$0]  (%p1205_p1), %s647_s30, 32, %s644_s23, %s620_s4  }
 0x141 PF: > { %s658_s22 = sand.u32 1, %s1064_s12   ;;  %p1378_p11 = scmp.ge.s32.totalorder %s1096_s20, 2 }
 0x142   : > { %s659_s11 = scalar_lea.sflag [#allocation4], %s658_s22 }
 0x143   : > { %p818_p2 = pnand %p1378_p11, %p1210_p3 }
 0x145   : > { %p819_p12 = pneg %p818_p2 }
 0x147   : > { %1055 = dma.done.wait (%p819_p12), %s659_s11, 32  }
 0x148   : > { %1057 = vsyncadd (%p819_p12), %s659_s11, 4294967264  ;;  %s668_s10 = scalar_lea.sflag [#allocation9], %s658_s22 }
 0x149   : > { %1059 = dma.done.wait (%p819_p12), %s668_s10, 32  }
 0x14a   : > { %1061 = vsyncadd (%p819_p12), %s668_s10, 4294967264  ;;  %s26_s20 = sadd.s32 1, %s1096_s20   ;;  %s1379_s7 = sld [smem:[#allocation14_spill]] }
 0x14b   : > { %p23_p13 = scmp.ge.s32.totalorder %s26_s20, 4   ;;  %s1380_s12 = smov %s1068_s13 }
 0x14c   : > { %s1381_s13 = smov %s1072_s14  ;;  %s1382_s14 = smov %s1196_s5 }
 0x14d   : > { %s1383_s15 = smov %s1080_s16  ;;  %s1384_s16 = smov %s1084_s17 }
 0x14e   : > { %s1385_s17 = smov %s1199_s6  ;;  %s1386_s18 = smov %s1092_s19 }
 0x14f   :  { %25 = sbr.rel (!%p23_p13) target bundleno = 14 (0xe), region = 107 }
 0x150   : > { %s1387_s19 = smov %s1379_s7 }
 0x154   :  { %673 = vsyncpa [#allocation3], 1 }
 0x155   :  { %675 = vsyncpa [#allocation3 + $0x1], 1 }
 0x156   :  { %676 = vsyncpa [#allocation6], 1 }
 0x157   :  { %678 = vsyncpa [#allocation6 + $0x1], 1 }
 0x158   :  { %679 = vsyncpa [#allocation4], 1 }
 0x159   :  { %681 = vsyncpa [#allocation4 + $0x1], 1 }
 0x15a   :  { %682 = vsyncpa [#allocation9], 1 }
 0x15b   :  { %684 = vsyncpa [#allocation9 + $0x1], 1 }

</bundles_post_ra>
